<compile_context>
chip_gen: v7x
topology: tpu7x:2x2x1
jax: 0.10.0
libtpu: 0.0.40
codegen_flags: <defaults>
</compile_context>

<pallas_src>
import jax
import jax.numpy as jnp
from jax.experimental import pallas as pl
from jax.experimental.pallas import tpu as pltpu

VOCAB = 1024
HIDDEN = 128          # multiple of 128: lane-dense table / output tiles
BATCH = 2
SEQ = 8
SCALE_EMB = 12.0      # MiniCPM config.scale_emb
TOK_BLOCK = 64        # tokens per grid step; multiple of 16 (bf16 sublane pack)


def embed_onehot_kernel(ids_ref, table_ref, out_ref):
    """out = one_hot(ids) * scale_emb @ table  on the MXU (table VMEM-resident)."""
    tok_block = ids_ref.shape[0]          # (TOK_BLOCK, 1) int32, ids along sublanes
    vocab = table_ref.shape[0]

    # One-hot built on the VPU: sublane ids broadcast against a lane-major vocab iota.
    vocab_iota = jax.lax.broadcasted_iota(jnp.int32, (tok_block, vocab), 1)
    hit = ids_ref[...] == vocab_iota                              # (TOK_BLOCK, VOCAB)
    onehot = jnp.where(hit, SCALE_EMB, 0.0).astype(table_ref.dtype)

    # Gather + scale as a single MXU matmul with f32 accumulation.
    out_ref[...] = jnp.dot(
        onehot, table_ref[...], preferred_element_type=jnp.float32
    ).astype(out_ref.dtype)


def embedding_forward(embed_table, input_ids, *, tok_block=TOK_BLOCK):
    """Pallas equivalent of `model.embed_tokens(input_ids) * config.scale_emb`."""
    vocab, hidden = embed_table.shape
    b, s = input_ids.shape
    n_tok = b * s
    n_pad = pl.cdiv(n_tok, tok_block) * tok_block

    ids = input_ids.reshape(n_tok).astype(jnp.int32)
    if n_pad != n_tok:
        ids = jnp.pad(ids, (0, n_pad - n_tok))       # padded rows sliced off below
    ids2d = ids.reshape(n_pad, 1)                    # sublane-major ids for the kernel

    out = pl.pallas_call(
        embed_onehot_kernel,
        out_shape=jax.ShapeDtypeStruct((n_pad, hidden), embed_table.dtype),
        grid=(n_pad // tok_block,),
        in_specs=[
            pl.BlockSpec((tok_block, 1), lambda i: (i, 0)),     # ids block
            pl.BlockSpec((vocab, hidden), lambda i: (0, 0)),    # table: VMEM-resident
        ],
        out_specs=pl.BlockSpec((tok_block, hidden), lambda i: (i, 0)),
        compiler_params=pltpu.CompilerParams(
            dimension_semantics=("parallel",),       # independent token blocks
            vmem_limit_bytes=32 * 1024 * 1024,       # explicit budget (v7x / v5e safe)
        ),
    )(ids2d, embed_table)

    return out[:n_tok].reshape(b, s, hidden)


if __name__ == "__main__":
    key = jax.random.PRNGKey(0)
    k_tab, k_ids = jax.random.split(key)

    # bf16 table, matching the real MiniCPM checkpoint dtype.
    embed_table = (0.02 * jax.random.normal(k_tab, (VOCAB, HIDDEN), jnp.float32)
                   ).astype(jnp.bfloat16)
    input_ids = jax.random.randint(k_ids, (BATCH, SEQ), 0, VOCAB, dtype=jnp.int32)

    fwd = jax.jit(embedding_forward)
    out = fwd(embed_table, input_ids)
    jax.block_until_ready(out)

    # Plain-JAX reference: embedding lookup * scale_emb (in f32 for comparison).
    ref = embed_table.astype(jnp.float32)[input_ids] * SCALE_EMB
    out_f32 = out.astype(jnp.float32)

    assert out.shape == (BATCH, SEQ, HIDDEN)
    assert out.dtype == embed_table.dtype
    assert bool(jnp.all(jnp.isfinite(out_f32)))
    # bf16-level tolerance (table and output are bf16).
    assert bool(jnp.allclose(out_f32, ref, atol=2e-2, rtol=2e-2))
    print("KERNEL_OK")
</pallas_src>

<mosaic_0001>
module attributes {stable_mosaic.version = 11 : i64} {
  func.func @embed_onehot_kernel(%arg0: i32, %arg1: memref<64x1xi32, #tpu.memory_space<vmem>>, %arg2: memref<1024x128xbf16, #tpu.memory_space<vmem>>, %arg3: memref<64x128xbf16, #tpu.memory_space<vmem>>) attributes {dimension_semantics = [#tpu.dimension_semantics<parallel>], iteration_bounds = array<i64: 1>, scalar_prefetch = 0 : i64, scratch_operands = 0 : i64, tpu.core_type = #tpu.core_type<tc>, window_params = [{transform_indices = @transform_0, window_bounds = array<i64: 64, 1>}, {pipeline_mode = #tpu.pipeline_mode<synchronous>, transform_indices = @transform_1, window_bounds = array<i64: 1024, 128>}, {transform_indices = @transform_2, window_bounds = array<i64: 64, 128>}]} {
    %0 = tpu.iota {dimensions = array<i32: 1>} : vector<64x1024xi32>
    %c0 = arith.constant 0 : index
    %c0_0 = arith.constant 0 : index
    %1 = vector.load %arg1[%c0, %c0_0] : memref<64x1xi32, #tpu.memory_space<vmem>>, vector<64x1xi32>
    %2 = vector.broadcast %1 : vector<64x1xi32> to vector<64x1024xi32>
    %3 = arith.cmpi eq, %2, %0 : vector<64x1024xi32>
    %cst = arith.constant 1.200000e+01 : f32
    %cst_1 = arith.constant 0.000000e+00 : f32
    %4 = vector.broadcast %cst : f32 to vector<64x1024xf32>
    %5 = vector.broadcast %cst_1 : f32 to vector<64x1024xf32>
    %6 = arith.select %3, %4, %5 : vector<64x1024xi1>, vector<64x1024xf32>
    %7 = arith.truncf %6 : vector<64x1024xf32> to vector<64x1024xbf16>
    %c0_2 = arith.constant 0 : index
    %c0_3 = arith.constant 0 : index
    %8 = vector.load %arg2[%c0_2, %c0_3] : memref<1024x128xbf16, #tpu.memory_space<vmem>>, vector<1024x128xbf16>
    %cst_4 = arith.constant dense<0.000000e+00> : vector<64x128xf32>
    %9 = tpu.matmul %7, %8, %cst_4 {dimension_numbers = #tpu.dot_dimension_numbers<[1], [0], [0], [1], [0, 0, 1, 1], [], []>} : vector<64x1024xbf16>, vector<1024x128xbf16>, vector<64x128xf32> -> vector<64x128xf32>
    %10 = arith.truncf %9 : vector<64x128xf32> to vector<64x128xbf16>
    %c0_5 = arith.constant 0 : index
    %c0_6 = arith.constant 0 : index
    %11 = vector.load %arg3[%c0_5, %c0_6] : memref<64x128xbf16, #tpu.memory_space<vmem>>, vector<64x128xbf16>
    tpu.vector_store %arg3[%c0_5, %c0_6], %10 {strides = array<i32>} : memref<64x128xbf16, #tpu.memory_space<vmem>>, vector<64x128xbf16>,
    return
  }
  func.func @transform_0(%arg0: i32) -> (i32, i32) {
    %c0_i32 = arith.constant 0 : i32
    %c0_i32_0 = arith.constant 0 : i32
    return %arg0, %c0_i32 : i32, i32
  }
  func.func @transform_1(%arg0: i32) -> (i32, i32) {
    %c0_i32 = arith.constant 0 : i32
    %c0_i32_0 = arith.constant 0 : i32
    %c0_i32_1 = arith.constant 0 : i32
    return %c0_i32, %c0_i32_0 : i32, i32
  }
  func.func @transform_2(%arg0: i32) -> (i32, i32) {
    %c0_i32 = arith.constant 0 : i32
    %c0_i32_0 = arith.constant 0 : i32
    return %arg0, %c0_i32 : i32, i32
  }
}

</mosaic_0001>

<bundles_post_ra>
// kernel: embedding_forward.1
= control target key start
LH: loop header
LB: loop body
LE: loop exit
PB: predicated region body
PF: predicated region fallthrough
CT: control target
= control target key end

     0   :  { %7 = vsyncpa [#allocation3], 0  ;;  %s1466_s9 = smov [#allocation2]   ;;  %s1725_s0 = inlined_call_operand.vmem [shape: s32[64,1], index: 0, kind: input, shape index: {}]   ;;  %s1726_s1 = inlined_call_operand.hbm [shape: bf16[1024,128], index: 1, kind: input, shape index: {}]   ;;  %s1727_s2 = inlined_call_operand.vmem [shape: bf16[64,128], index: 2, kind: output, shape index: {}]  }
   0x1   :  { %s15_s10 = sshll.u32 %s1466_s9, 4  ;;  %s1442_s13 = scalar_lea.hbm %s1726_s1, 8192  ;;  %s16_s10 = int_to_ptr.vmem [resolvable:$true] %s15_s10 }
   0x2   :  { %p1443_p0 = scmp.ne.s32.totalorder %s1726_s1, %s1442_s13  ;;  %p1446_p1 = scmp.lt.u32.totalorder %s1442_s13, %s1726_s1 }
   0x4   :  { %p1448_p2 = pnand %p1446_p1, %p1443_p0 }
   0x6   :  { %1451 = shalt.err (!%p1448_p2)
}
   0x7   :  { %s1452_s18 = scalar_lea.vmem %s16_s10, 8192  ;;  %p1457_p4 = scmp.lt.s32.totalorder %s16_s10, %s16_s10 }
   0x8   :  { %p1453_p3 = scmp.ne.s32.totalorder %s16_s10, %s1452_s18  ;;  %p1458_p5 = scmp.lt.s32.totalorder %s1452_s18, %s1452_s18 }
   0xa   :  { %p1459_p6 = por %p1458_p5, %p1457_p4 }
   0xc   :  { %p1460_p7 = pnand %p1459_p6, %p1453_p3 }
   0xe   :  { %1463 = shalt.err (!%p1460_p7)
}
   0xf   :  { %s1467_s19 = smov 64   ;;  %s1468_s20 = smov 4  }
  0x10   :  { %21 = dma.hbm_to_vmem [thread:$0]  %s1726_s1, 8192, %s16_s10, [#allocation3], %s1467_s19, %s1467_s19, %s1468_s20  }
  0x11   :  { %1464 = dma.done.wait [#allocation3], 8192  }
  0x12   :  { %1465 = vsyncadd [#allocation3], 4294959104  ;;  %v1469_v0 = vmov 0   ;;  %v37_v1 = vld [vmem:[%s1725_s0 + $0x10] sm:$0xff]  ;;  %v35_v2 = vld [vmem:[%s1725_s0] sm:$0xff]  ;;  %v26_v43 = vlaneseq }
  0x13   :  { %1377 = vset.pattern.permute.xlu1 %v1469_v0  ;;  %1376 = vset.pattern.permute.xlu0 %v1469_v0  ;;  %v38_v3 = vld [vmem:[%s1725_s0 + $0x18] sm:$0xff]  ;;  %v36_v4 = vld [vmem:[%s1725_s0 + $0x8] sm:$0xff]  ;;  %v1378_v5 = vld [vmem:[#allocation2 + $0x40] sm:$0xff]   ;;  %v1470_v53 = vmov 12.0|12.0  }
  0x14   :  { %50 = vperm.xlu1 %1377, %v37_v1   ;;  %44 = vperm.xlu0 %1376, %v35_v2   ;;  %v40_v6 = vld [vmem:[%s1725_s0 + $0x28] sm:$0xff]  ;;  %v39_v7 = vld [vmem:[%s1725_s0 + $0x20] sm:$0xff]  ;;  %v42_v12 = vld [vmem:[%s1725_s0 + $0x38] sm:$0xff]  ;;  %v1522_v44 = vand.u32 127, %v26_v43 }
  0x15   :  { %v1379_v8 = vld [vmem:[#allocation2] sm:$0xff]   ;;  %1211 = vmatprep.subr.bf16.mxu0 %v1378_v5  ;;  %v1382_v11 = vld [vmem:[#allocation2 + $0x48] sm:$0xff]   ;;  %v41_v13 = vld [vmem:[%s1725_s0 + $0x30] sm:$0xff] }
  0x16   :  { %v1380_v9 = vld [vmem:[#allocation2 + $0xc0] sm:$0xff]   ;;  %1212 = vmatpush3.bf16.msra.mxu0 %v1379_v8  ;;  %v1383_v14 = vld [vmem:[#allocation2 + $0x8] sm:$0xff]   ;;  %v1386_v17 = vld [vmem:[#allocation2 + $0x50] sm:$0xff]   ;;  %v1529_v47 = vadd.s32 128, %v1522_v44  ;;  %v1532_v48 = vadd.s32 384, %v1522_v44  ;;  %v1537_v50 = vadd.s32 256, %v1522_v44 }
  0x17   :  { %v1381_v10 = vld [vmem:[#allocation2 + $0x80] sm:$0xff]   ;;  %1251 = vmatprep.subr.bf16.mxu1 %v1380_v9  ;;  %v1384_v15 = vld [vmem:[#allocation2 + $0xc8] sm:$0xff]   ;;  %1213 = vmatprep.subr.bf16.mxu0 %v1382_v11  ;;  %v1387_v18 = vld [vmem:[#allocation2 + $0x10] sm:$0xff]  }
  0x18   :  { %53 = vperm.xlu1 %1377, %v38_v3   ;;  %47 = vperm.xlu0 %1376, %v36_v4   ;;  %v1385_v16 = vld [vmem:[#allocation2 + $0x88] sm:$0xff]   ;;  %v1388_v19 = vld [vmem:[#allocation2 + $0xd0] sm:$0xff]   ;;  %v1390_v21 = vld [vmem:[#allocation2 + $0x58] sm:$0xff]  }
  0x19   :  { %1252 = vmatpush3.bf16.msra.mxu1 %v1381_v10  ;;  %v1389_v20 = vld [vmem:[#allocation2 + $0x90] sm:$0xff]   ;;  %v1391_v22 = vld [vmem:[#allocation2 + $0x18] sm:$0xff]   ;;  %v1394_v25 = vld [vmem:[#allocation2 + $0x60] sm:$0xff]  }
  0x1a   :  { %1214 = vmatpush3.bf16.msra.mxu0 %v1383_v14  ;;  %1253 = vmatprep.subr.bf16.mxu1 %v1384_v15  ;;  %v1392_v23 = vld [vmem:[#allocation2 + $0xd8] sm:$0xff]   ;;  %v1395_v26 = vld [vmem:[#allocation2 + $0x20] sm:$0xff]   ;;  %v1398_v29 = vld [vmem:[#allocation2 + $0x68] sm:$0xff]  }
  0x1b   :  { %1215 = vmatprep.subr.bf16.mxu0 %v1386_v17  ;;  %v1393_v24 = vld [vmem:[#allocation2 + $0x98] sm:$0xff]   ;;  %v1396_v27 = vld [vmem:[#allocation2 + $0xe0] sm:$0xff]   ;;  %v1399_v30 = vld [vmem:[#allocation2 + $0x28] sm:$0xff]  }
  0x1c   :  { %59 = vperm.xlu1 %1377, %v40_v6   ;;  %56 = vperm.xlu0 %1376, %v39_v7   ;;  %v1397_v28 = vld [vmem:[#allocation2 + $0xa0] sm:$0xff]   ;;  %v1400_v31 = vld [vmem:[#allocation2 + $0xe8] sm:$0xff]   ;;  %v1402_v33 = vld [vmem:[#allocation2 + $0x70] sm:$0xff]  }
  0x1d   :  { %1254 = vmatpush3.bf16.msra.mxu1 %v1385_v16  ;;  %v1401_v32 = vld [vmem:[#allocation2 + $0xa8] sm:$0xff]   ;;  %v1403_v34 = vld [vmem:[#allocation2 + $0x30] sm:$0xff]   ;;  %v1406_v37 = vld [vmem:[#allocation2 + $0x78] sm:$0xff]   ;;  %v1627_v16 = vadd.s32 640, %v1522_v44 }
  0x1e   :  { %1216 = vmatpush3.bf16.msra.mxu0 %v1387_v18  ;;  %1255 = vmatprep.subr.bf16.mxu1 %v1388_v19  ;;  %v1404_v35 = vld [vmem:[#allocation2 + $0xf0] sm:$0xff]   ;;  %v1407_v38 = vld [vmem:[#allocation2 + $0x38] sm:$0xff]   ;;  %v1410_v41 = vld [vmem:[#allocation2 + $0x140] sm:$0xff]   ;;  %v1634_v18 = vadd.s32 896, %v1522_v44 }
  0x1f   :  { %1217 = vmatprep.subr.bf16.mxu0 %v1390_v21  ;;  %v1405_v36 = vld [vmem:[#allocation2 + $0xb0] sm:$0xff]   ;;  %v1408_v39 = vld [vmem:[#allocation2 + $0xf8] sm:$0xff]   ;;  %v1411_v42 = vld [vmem:[#allocation2 + $0x1c0] sm:$0xff]  }
  0x20   :  { %65 = vperm.xlu1 %1377, %v42_v12   ;;  %62 = vperm.xlu0 %1376, %v41_v13   ;;  %v1409_v40 = vld [vmem:[#allocation2 + $0xb8] sm:$0xff]   ;;  %v1412_v52 = vld [vmem:[#allocation2 + $0x100] sm:$0xff]   ;;  %v1414_v55 = vld [vmem:[#allocation2 + $0x148] sm:$0xff]  }
  0x21   :  { %1256 = vmatpush3.bf16.msra.mxu1 %v1389_v20  ;;  %v1413_v54 = vld [vmem:[#allocation2 + $0x180] sm:$0xff]   ;;  %v1416_v56 = vld [vmem:[#allocation2 + $0x1c8] sm:$0xff]   ;;  %v1418_v61 = vld [vmem:[#allocation2 + $0x150] sm:$0xff]  }
  0x22   :  { %1218 = vmatpush3.bf16.msra.mxu0 %v1391_v22  ;;  %1257 = vmatprep.subr.bf16.mxu1 %v1392_v23  ;;  %v1415_v57 = vld [vmem:[#allocation2 + $0x108] sm:$0xff]   ;;  %v1420_v62 = vld [vmem:[#allocation2 + $0x1d0] sm:$0xff]   ;;  %v1422_v1 = vld [vmem:[#allocation2 + $0x158] sm:$0xff]  }
  0x23   :  { %1219 = vmatprep.subr.bf16.mxu0 %v1394_v25  ;;  %v1417_v60 = vld [vmem:[#allocation2 + $0x188] sm:$0xff]   ;;  %v1419_v63 = vld [vmem:[#allocation2 + $0x110] sm:$0xff]   ;;  %v1424_v2 = vld [vmem:[#allocation2 + $0x1d8] sm:$0xff]  }
  0x24   :  { %v1421_v0 = vld [vmem:[#allocation2 + $0x190] sm:$0xff]   ;;  %v1423_v3 = vld [vmem:[#allocation2 + $0x118] sm:$0xff]   ;;  %v1426_v6 = vld [vmem:[#allocation2 + $0x160] sm:$0xff]  }
  0x25   :  { %1258 = vmatpush3.bf16.msra.mxu1 %v1393_v24  ;;  %v1425_v7 = vld [vmem:[#allocation2 + $0x198] sm:$0xff]   ;;  %v1428_v8 = vld [vmem:[#allocation2 + $0x1e0] sm:$0xff]   ;;  %v1430_v11 = vld [vmem:[#allocation2 + $0x168] sm:$0xff]   ;;  %v31_v24 = vadd.s32 512, %v1522_v44 }
  0x26   :  { %1220 = vmatpush3.bf16.msra.mxu0 %v1395_v26  ;;  %1259 = vmatprep.subr.bf16.mxu1 %v1396_v27  ;;  %v1427_v9 = vld [vmem:[#allocation2 + $0x120] sm:$0xff]   ;;  %v1432_v12 = vld [vmem:[#allocation2 + $0x1e8] sm:$0xff]   ;;  %v1434_v14 = vld [vmem:[#allocation2 + $0x170] sm:$0xff]   ;;  %v33_v26 = vadd.s32 768, %v1522_v44 }
  0x27   :  { %1221 = vmatprep.subr.bf16.mxu0 %v1398_v29  ;;  %v1429_v10 = vld [vmem:[#allocation2 + $0x1a0] sm:$0xff]   ;;  %v1431_v13 = vld [vmem:[#allocation2 + $0x128] sm:$0xff]   ;;  %v1436_v17 = vld [vmem:[#allocation2 + $0x1f0] sm:$0xff]  }
  0x28   :  { %v1433_v15 = vld [vmem:[#allocation2 + $0x1a8] sm:$0xff]   ;;  %v1435_v19 = vld [vmem:[#allocation2 + $0x130] sm:$0xff]   ;;  %v1438_v21 = vld [vmem:[#allocation2 + $0x178] sm:$0xff]  }
  0x29   :  { %1260 = vmatpush3.bf16.msra.mxu1 %v1397_v28  ;;  %v1437_v20 = vld [vmem:[#allocation2 + $0x1b0] sm:$0xff]   ;;  %v1440_v22 = vld [vmem:[#allocation2 + $0x1f8] sm:$0xff]  }
  0x2a   :  { %1222 = vmatpush3.bf16.msra.mxu0 %v1399_v30  ;;  %1261 = vmatprep.subr.bf16.mxu1 %v1400_v31  ;;  %v1439_v23 = vld [vmem:[#allocation2 + $0x138] sm:$0xff]  }
  0x2b   :  { %1223 = vmatprep.subr.bf16.mxu0 %v1402_v33  ;;  %v1441_v25 = vld [vmem:[#allocation2 + $0x1b8] sm:$0xff]  }
  0x2d   :  { %1262 = vmatpush3.bf16.msra.mxu1 %v1401_v32 }
  0x2e   :  { %1224 = vmatpush3.bf16.msra.mxu0 %v1403_v34  ;;  %1263 = vmatprep.subr.bf16.mxu1 %v1404_v35 }
  0x2f   :  { %1225 = vmatprep.subr.bf16.mxu0 %v1406_v37 }
  0x31   :  { %1264 = vmatpush3.bf16.msra.mxu1 %v1405_v36 }
  0x32   :  { %1226 = vmatpush3.bf16.msra.mxu0 %v1407_v38  ;;  %1265 = vmatprep.subr.bf16.mxu1 %v1408_v39 }
  0x33   :  { %1291 = vmatprep.subr.bf16.mxu0 %v1410_v41 }
  0x35   :  { %1266 = vmatpush3.bf16.msra.mxu1 %v1409_v40 }
  0x36   :  { %1331 = vmatprep.subr.bf16.mxu1 %v1411_v42 }
  0x93   :  { %v1524_v45 = vpop.permute.xlu1 %50  ;;  %v1526_v46 = vpop.permute.xlu0 %44 }
  0x94   :  { %vm68_vm0 = vcmp.eq.s32.totalorder %v1526_v46, %v1529_v47  ;;  %vm70_vm5 = vcmp.eq.s32.totalorder %v1526_v46, %v1532_v48  ;;  %vm67_vm8 = vcmp.eq.s32.totalorder %v1526_v46, %v1522_v44  ;;  %vm84_vm9 = vcmp.eq.s32.totalorder %v1524_v45, %v1529_v47 }
  0x95   :  { %vm69_vm12 = vcmp.eq.s32.totalorder %v1526_v46, %v1537_v50  ;;  %vm86_vm13 = vcmp.eq.s32.totalorder %v1524_v45, %v1532_v48 }
  0x97   :  { %v1534_v49 = vpop.permute.xlu0 %47  ;;  %v1539_v51 = vpop.permute.xlu1 %53 }
  0x98   :  { %vm76_vm1 = vcmp.eq.s32.totalorder %v1534_v49, %v1529_v47  ;;  %vm78_vm2 = vcmp.eq.s32.totalorder %v1534_v49, %v1532_v48  ;;  %vm75_vm3 = vcmp.eq.s32.totalorder %v1534_v49, %v1522_v44  ;;  %vm77_vm6 = vcmp.eq.s32.totalorder %v1534_v49, %v1537_v50 }
  0x99   :  { %vm1108_vm4 = vmpackc.low %vm76_vm1, %vm68_vm0  ;;  %vm92_vm10 = vcmp.eq.s32.totalorder %v1539_v51, %v1529_v47  ;;  %vm94_vm14 = vcmp.eq.s32.totalorder %v1539_v51, %v1532_v48 }
  0x9a   :  { %1109 = vmatprep.mubr.msk.bf16.mxu0 %vm1108_vm4, %v1470_v53  ;;  %vm1124_vm7 = vmpackc.low %vm78_vm2, %vm70_vm5  ;;  %vm83_vm2 = vcmp.eq.s32.totalorder %v1524_v45, %v1522_v44  ;;  %vm85_vm4 = vcmp.eq.s32.totalorder %v1524_v45, %v1537_v50  ;;  %vm93_vm5 = vcmp.eq.s32.totalorder %v1539_v51, %v1537_v50 }
  0x9b   :  { %1125 = vmatprep.mubr.msk.bf16.mxu1 %vm1124_vm7, %v1470_v53  ;;  %vm1110_vm11 = vmpackc.low %vm75_vm3, %vm67_vm8  ;;  %v1572_v58 = vpop.permute.xlu1 %59  ;;  %v1574_v59 = vpop.permute.xlu0 %56  ;;  %vm91_vm3 = vcmp.eq.s32.totalorder %v1539_v51, %v1522_v44 }
  0x9c   :  { %1111 = vmatmul.mubr.msk.bf16.vlgmr.msra.gmra.mrb[0].mxu0 %vm1110_vm11, %v1470_v53  ;;  %vm1126_vm15 = vmpackc.low %vm77_vm6, %vm69_vm12  ;;  %vm100_vm6 = vcmp.eq.s32.totalorder %v1574_v59, %v1529_v47  ;;  %vm108_vm7 = vcmp.eq.s32.totalorder %v1572_v58, %v1529_v47 }
  0x9d   :  { %1127 = vmatmul.mubr.msk.bf16.vlgmr.msra.gmra.mrb[0].mxu1 %vm1126_vm15, %v1470_v53  ;;  %1292 = vmatpush3.bf16.msra.mxu0 %v1412_v52  ;;  %vm1112_vm0 = vmpackc.low %vm92_vm10, %vm84_vm9  ;;  %vm102_vm9 = vcmp.eq.s32.totalorder %v1574_v59, %v1532_v48  ;;  %vm110_vm10 = vcmp.eq.s32.totalorder %v1572_v58, %v1532_v48  ;;  %vm107_vm15 = vcmp.eq.s32.totalorder %v1572_v58, %v1522_v44 }
  0x9e   :  { %1332 = vmatpush3.bf16.msra.mxu1 %v1413_v54  ;;  %1113 = vmatprep.mubr.msk.bf16.mxu0 %vm1112_vm0, %v1470_v53  ;;  %vm1128_vm1 = vmpackc.low %vm94_vm14, %vm86_vm13  ;;  %vm99_vm14 = vcmp.eq.s32.totalorder %v1574_v59, %v1522_v44  ;;  %vm101_vm0 = vcmp.eq.s32.totalorder %v1574_v59, %v1537_v50 }
  0x9f   :  { %1129 = vmatprep.mubr.msk.bf16.mxu1 %vm1128_vm1, %v1470_v53  ;;  %1293 = vmatprep.subr.bf16.mxu0 %v1414_v55  ;;  %vm1114_vm8 = vmpackc.low %vm91_vm3, %vm83_vm2  ;;  %v1596_v4 = vpop.permute.xlu1 %65  ;;  %v1598_v5 = vpop.permute.xlu0 %62  ;;  %vm109_vm1 = vcmp.eq.s32.totalorder %v1572_v58, %v1537_v50 }
  0xa0   :  { %1333 = vmatprep.subr.bf16.mxu1 %v1416_v56  ;;  %vm1130_vm11 = vmpackc.low %vm93_vm5, %vm85_vm4  ;;  %vm116_vm2 = vcmp.eq.s32.totalorder %v1598_v5, %v1529_v47  ;;  %vm124_vm3 = vcmp.eq.s32.totalorder %v1596_v4, %v1529_v47  ;;  %vm118_vm5 = vcmp.eq.s32.totalorder %v1598_v5, %v1532_v48 }
  0xa1   :  { %1294 = vmatpush3.bf16.msra.mxu0 %v1415_v57  ;;  %vm1116_vm12 = vmpackc.low %vm108_vm7, %vm100_vm6  ;;  %vm126_vm6 = vcmp.eq.s32.totalorder %v1596_v4, %v1532_v48 }
  0xa2   :  { %1334 = vmatpush3.bf16.msra.mxu1 %v1417_v60  ;;  %1295 = vmatprep.subr.bf16.mxu0 %v1418_v61  ;;  %vm1132_vm13 = vmpackc.low %vm110_vm10, %vm102_vm9  ;;  %vm115_vm10 = vcmp.eq.s32.totalorder %v1598_v5, %v1522_v44 }
  0xa3   :  { %1335 = vmatprep.subr.bf16.mxu1 %v1420_v62  ;;  %vm1118_vm4 = vmpackc.low %vm107_vm15, %vm99_vm14  ;;  %vm80_vm14 = vcmp.eq.s32.totalorder %v1534_v49, %v1627_v16 }
  0xa4   :  { %1115 = vmatmul.mubr.msk.bf16.gmra.mrb[4].mxu0 %vm1114_vm8, %v1470_v53  ;;  %vm1134_vm7 = vmpackc.low %vm109_vm1, %vm101_vm0  ;;  %vm82_vm0 = vcmp.eq.s32.totalorder %v1534_v49, %v1634_v18 }
  0xa5   :  { %1131 = vmatmul.mubr.msk.bf16.gmra.mrb[4].mxu1 %vm1130_vm11, %v1470_v53  ;;  %1296 = vmatpush3.bf16.msra.mxu0 %v1419_v63  ;;  %vm1120_vm8 = vmpackc.low %vm124_vm3, %vm116_vm2  ;;  %vm123_vm11 = vcmp.eq.s32.totalorder %v1596_v4, %v1522_v44  ;;  %vm72_vm2 = vcmp.eq.s32.totalorder %v1526_v46, %v1627_v16 }
  0xa6   :  { %1117 = vmatprep.mubr.msk.bf16.mxu0 %vm1116_vm12, %v1470_v53  ;;  %1133 = vmatprep.mubr.msk.bf16.mxu1 %vm1132_vm13, %v1470_v53  ;;  %vm1136_vm9 = vmpackc.low %vm126_vm6, %vm118_vm5  ;;  %vm117_vm12 = vcmp.eq.s32.totalorder %v1598_v5, %v1537_v50  ;;  %vm125_vm13 = vcmp.eq.s32.totalorder %v1596_v4, %v1537_v50  ;;  %vm79_vm6 = vcmp.eq.s32.totalorder %v1534_v49, %v31_v24 }
  0xa7   :  { %1336 = vmatpush3.bf16.msra.mxu1 %v1421_v0  ;;  %1297 = vmatprep.subr.bf16.mxu0 %v1422_v1  ;;  %vm1122_vm15 = vmpackc.low %vm123_vm11, %vm115_vm10  ;;  %vm81_vm10 = vcmp.eq.s32.totalorder %v1534_v49, %v33_v26 }
  0xa8   :  { %1337 = vmatprep.subr.bf16.mxu1 %v1424_v2  ;;  %vm1138_vm1 = vmpackc.low %vm125_vm13, %vm117_vm12  ;;  %vm90_vm12 = vcmp.eq.s32.totalorder %v1524_v45, %v1634_v18  ;;  %vm98_vm13 = vcmp.eq.s32.totalorder %v1539_v51, %v1634_v18 }
  0xa9   :  { %1298 = vmatpush3.bf16.msra.mxu0 %v1423_v3  ;;  %vm1140_vm3 = vmpackc.low %vm80_vm14, %vm72_vm2  ;;  %vm73_vm14 = vcmp.eq.s32.totalorder %v1526_v46, %v33_v26  ;;  %vm87_vm2 = vcmp.eq.s32.totalorder %v1524_v45, %v31_v24 }
  0xaa   :  { %1299 = vmatprep.subr.bf16.mxu0 %v1426_v6 }
  0xab   :  { %1338 = vmatpush3.bf16.msra.mxu1 %v1425_v7 }
  0xac   :  { %1119 = vmatmul.mubr.msk.bf16.gmra.mrb[8].mxu0 %vm1118_vm4, %v1470_v53  ;;  %1339 = vmatprep.subr.bf16.mxu1 %v1428_v8  ;;  %vm74_vm4 = vcmp.eq.s32.totalorder %v1526_v46, %v1634_v18 }
  0xad   :  { %1135 = vmatmul.mubr.msk.bf16.gmra.mrb[8].mxu1 %vm1134_vm7, %v1470_v53  ;;  %1300 = vmatpush3.bf16.msra.mxu0 %v1427_v9  ;;  %vm1156_vm5 = vmpackc.low %vm82_vm0, %vm74_vm4  ;;  %vm88_vm7 = vcmp.eq.s32.totalorder %v1524_v45, %v1627_v16  ;;  %vm104_vm4 = vcmp.eq.s32.totalorder %v1574_v59, %v1627_v16 }
  0xae   :  { %1121 = vmatprep.mubr.msk.bf16.mxu0 %vm1120_vm8, %v1470_v53  ;;  %1137 = vmatprep.mubr.msk.bf16.mxu1 %vm1136_vm9, %v1470_v53  ;;  %vm96_vm8 = vcmp.eq.s32.totalorder %v1539_v51, %v1627_v16  ;;  %vm71_vm9 = vcmp.eq.s32.totalorder %v1526_v46, %v31_v24  ;;  %vm1158_vm0 = vmpackc.low %vm81_vm10, %vm73_vm14  ;;  %vm114_vm10 = vcmp.eq.s32.totalorder %v1572_v58, %v1634_v18 }
  0xaf   :  { %1340 = vmatpush3.bf16.msra.mxu1 %v1429_v10  ;;  %1301 = vmatprep.subr.bf16.mxu0 %v1430_v11  ;;  %vm1142_vm11 = vmpackc.low %vm79_vm6, %vm71_vm9  ;;  %vm89_vm6 = vcmp.eq.s32.totalorder %v1524_v45, %v33_v26  ;;  %vm106_vm9 = vcmp.eq.s32.totalorder %v1574_v59, %v1634_v18  ;;  %vm103_vm14 = vcmp.eq.s32.totalorder %v1574_v59, %v31_v24 }
  0xb0   :  { %1341 = vmatprep.subr.bf16.mxu1 %v1432_v12 }
  0xb1   :  { %1302 = vmatpush3.bf16.msra.mxu0 %v1431_v13 }
  0xb2   :  { %1303 = vmatprep.subr.bf16.mxu0 %v1434_v14 }
  0xb3   :  { %1342 = vmatpush3.bf16.msra.mxu1 %v1433_v15 }
  0xb4   :  { %1123 = vmatmul.mubr.msk.bf16.gmra.mrb[12].mxu0 %vm1122_vm15, %v1470_v53  ;;  %1343 = vmatprep.subr.bf16.mxu1 %v1436_v17  ;;  %vm1144_vm15 = vmpackc.low %vm96_vm8, %vm88_vm7  ;;  %vm97_vm7 = vcmp.eq.s32.totalorder %v1539_v51, %v33_v26 }
  0xb5   :  { %1139 = vmatmul.mubr.msk.bf16.gmra.mrb[12].mxu1 %vm1138_vm1, %v1470_v53  ;;  %1304 = vmatpush3.bf16.msra.mxu0 %v1435_v19  ;;  %vm1160_vm1 = vmpackc.low %vm98_vm13, %vm90_vm12 }
  0xb6   :  { %1141 = vmatprep.mubr.msk.bf16.mxu0 %vm1140_vm3, %v1470_v53  ;;  %1157 = vmatprep.mubr.msk.bf16.mxu1 %vm1156_vm5, %v1470_v53  ;;  %vm95_vm3 = vcmp.eq.s32.totalorder %v1539_v51, %v31_v24  ;;  %vm112_vm5 = vcmp.eq.s32.totalorder %v1572_v58, %v1627_v16  ;;  %vm1162_vm12 = vmpackc.low %vm97_vm7, %vm89_vm6  ;;  %vm130_vm6 = vcmp.eq.s32.totalorder %v1596_v4, %v1634_v18 }
  0xb7   :  { %1344 = vmatpush3.bf16.msra.mxu1 %v1437_v20  ;;  %1305 = vmatprep.subr.bf16.mxu0 %v1438_v21  ;;  %vm1146_vm8 = vmpackc.low %vm95_vm3, %vm87_vm2  ;;  %vm105_vm2 = vcmp.eq.s32.totalorder %v1574_v59, %v33_v26  ;;  %vm113_vm3 = vcmp.eq.s32.totalorder %v1572_v58, %v33_v26 }
  0xb8   :  { %1345 = vmatprep.subr.bf16.mxu1 %v1440_v22  ;;  %vm1164_vm13 = vmpackc.low %vm114_vm10, %vm106_vm9  ;;  %vm119_vm10 = vcmp.eq.s32.totalorder %v1598_v5, %v31_v24 }
  0xb9   :  { %1306 = vmatpush3.bf16.msra.mxu0 %v1439_v23 }
  0xbb   :  { %1346 = vmatpush3.bf16.msra.mxu1 %v1441_v25 }
  0xbc   :  { %1143 = vmatmul.mubr.msk.bf16.vlgmr.msra.gmra.mrb[16].mxu0 %vm1142_vm11, %v1470_v53  ;;  %vm1148_vm11 = vmpackc.low %vm112_vm5, %vm104_vm4  ;;  %vm122_vm5 = vcmp.eq.s32.totalorder %v1598_v5, %v1634_v18 }
  0xbd   :  { %1145 = vmatprep.mubr.msk.bf16.mxu0 %vm1144_vm15, %v1470_v53  ;;  %vm111_vm15 = vcmp.eq.s32.totalorder %v1572_v58, %v31_v24  ;;  %vm1168_vm9 = vmpackc.low %vm130_vm6, %vm122_vm5 }
  0xbe   :  { %1159 = vmatmul.mubr.msk.bf16.vlgmr.msra.gmra.mrb[16].mxu1 %vm1158_vm0, %v1470_v53  ;;  %vm120_vm0 = vcmp.eq.s32.totalorder %v1598_v5, %v1627_v16  ;;  %vm1150_vm4 = vmpackc.low %vm111_vm15, %vm103_vm14 }
  0xbf   :  { %1161 = vmatprep.mubr.msk.bf16.mxu1 %vm1160_vm1, %v1470_v53  ;;  %vm128_vm1 = vcmp.eq.s32.totalorder %v1596_v4, %v1627_v16 }
  0xc0   :  { %vm1152_vm7 = vmpackc.low %vm128_vm1, %vm120_vm0 }
  0xc4   :  { %1147 = vmatmul.mubr.msk.bf16.gmra.mrb[20].mxu0 %vm1146_vm8, %v1470_v53  ;;  %vm1166_vm8 = vmpackc.low %vm113_vm3, %vm105_vm2 }
  0xc5   :  { %1149 = vmatprep.mubr.msk.bf16.mxu0 %vm1148_vm11, %v1470_v53  ;;  %vm127_vm11 = vcmp.eq.s32.totalorder %v1596_v4, %v31_v24 }
  0xc6   :  { %1163 = vmatmul.mubr.msk.bf16.gmra.mrb[20].mxu1 %vm1162_vm12, %v1470_v53  ;;  %vm121_vm12 = vcmp.eq.s32.totalorder %v1598_v5, %v33_v26  ;;  %vm1154_vm14 = vmpackc.low %vm127_vm11, %vm119_vm10 }
  0xc7   :  { %1165 = vmatprep.mubr.msk.bf16.mxu1 %vm1164_vm13, %v1470_v53  ;;  %vm129_vm13 = vcmp.eq.s32.totalorder %v1596_v4, %v33_v26 }
  0xc8   :  { %vm1170_vm15 = vmpackc.low %vm129_vm13, %vm121_vm12 }
  0xcc   :  { %1151 = vmatmul.mubr.msk.bf16.gmra.mrb[24].mxu0 %vm1150_vm4, %v1470_v53 }
  0xcd   :  { %1153 = vmatprep.mubr.msk.bf16.mxu0 %vm1152_vm7, %v1470_v53 }
  0xce   :  { %1167 = vmatmul.mubr.msk.bf16.gmra.mrb[24].mxu1 %vm1166_vm8, %v1470_v53 }
  0xcf   :  { %1169 = vmatprep.mubr.msk.bf16.mxu1 %vm1168_vm9, %v1470_v53 }
  0xd4   :  { %1155 = vmatmul.mubr.msk.bf16.gmra.mrb[28].mxu0 %vm1154_vm14, %v1470_v53 }
  0xd6   :  { %1171 = vmatmul.mubr.msk.bf16.gmra.mrb[28].mxu1 %vm1170_vm15, %v1470_v53 }
 0x16f   :  { %v1227_v27 = vpop.f32.mrb[0].mxu0 }
 0x170   :  { %v1267_v28 = vpop.f32.mrb[0].mxu1  ;;  %v1228_v29 = vpop.f32.mrb[1].mxu0 }
 0x171   :  { %v1229_v30 = vadd.f32 %v1228_v29, %v1227_v27  ;;  %v1268_v31 = vpop.f32.mrb[1].mxu1  ;;  %v1230_v32 = vpop.f32.mrb[2].mxu0 }
 0x172   :  { %v1269_v33 = vadd.f32 %v1268_v31, %v1267_v28  ;;  %v1270_v34 = vpop.f32.mrb[2].mxu1  ;;  %v1231_v35 = vpop.f32.mrb[3].mxu0 }
 0x173   :  { %v1232_v36 = vadd.f32 %v1231_v35, %v1230_v32  ;;  %v1271_v37 = vpop.f32.mrb[3].mxu1 }
 0x174   :  { %v839_v38 = vadd.f32 %v1269_v33, %v1229_v30  ;;  %v1272_v39 = vadd.f32 %v1271_v37, %v1270_v34 }
 0x176   :  { %v842_v40 = vadd.f32 %v1272_v39, %v1232_v36 }
 0x177   :  { %v1233_v41 = vpop.f32.mrb[4].mxu0 }
 0x178   :  { %v1273_v42 = vpop.f32.mrb[4].mxu1  ;;  %v1234_v43 = vpop.f32.mrb[5].mxu0 }
 0x179   :  { %v1235_v44 = vadd.f32 %v1234_v43, %v1233_v41  ;;  %v1274_v45 = vpop.f32.mrb[5].mxu1  ;;  %v1236_v46 = vpop.f32.mrb[6].mxu0 }
 0x17a   :  { %v1275_v47 = vadd.f32 %v1274_v45, %v1273_v42  ;;  %v1276_v48 = vpop.f32.mrb[6].mxu1  ;;  %v1237_v49 = vpop.f32.mrb[7].mxu0 }
 0x17b   :  { %v1238_v50 = vadd.f32 %v1237_v49, %v1236_v46  ;;  %v1277_v51 = vpop.f32.mrb[7].mxu1 }
 0x17c   :  { %v847_v52 = vadd.f32 %v1275_v47, %v1235_v44  ;;  %v1278_v53 = vadd.f32 %v1277_v51, %v1276_v48 }
 0x17e   :  { %v850_v54 = vadd.f32 %v1278_v53, %v1238_v50 }
 0x17f   :  { %v1239_v55 = vpop.f32.mrb[8].mxu0 }
 0x180   :  { %v1279_v56 = vpop.f32.mrb[8].mxu1  ;;  %v1240_v57 = vpop.f32.mrb[9].mxu0 }
 0x181   :  { %v1241_v58 = vadd.f32 %v1240_v57, %v1239_v55  ;;  %v1280_v59 = vpop.f32.mrb[9].mxu1  ;;  %v1242_v60 = vpop.f32.mrb[10].mxu0 }
 0x182   :  { %v1281_v61 = vadd.f32 %v1280_v59, %v1279_v56  ;;  %v1282_v62 = vpop.f32.mrb[10].mxu1  ;;  %v1243_v63 = vpop.f32.mrb[11].mxu0 }
 0x183   :  { %v1244_v0 = vadd.f32 %v1243_v63, %v1242_v60  ;;  %v1283_v1 = vpop.f32.mrb[11].mxu1 }
 0x184   :  { %v855_v2 = vadd.f32 %v1281_v61, %v1241_v58  ;;  %v1284_v3 = vadd.f32 %v1283_v1, %v1282_v62 }
 0x186   :  { %v1704_v4 = vadd.f32 %v1284_v3, %v1244_v0 }
 0x187   :  { %v1245_v5 = vpop.f32.mrb[12].mxu0 }
 0x188   :  { %v1285_v6 = vpop.f32.mrb[12].mxu1  ;;  %v1246_v7 = vpop.f32.mrb[13].mxu0 }
 0x189   :  { %v1247_v8 = vadd.f32 %v1246_v7, %v1245_v5  ;;  %v1286_v9 = vpop.f32.mrb[13].mxu1  ;;  %v1248_v10 = vpop.f32.mrb[14].mxu0 }
 0x18a   :  { %v1287_v11 = vadd.f32 %v1286_v9, %v1285_v6  ;;  %v1288_v12 = vpop.f32.mrb[14].mxu1  ;;  %v1249_v13 = vpop.f32.mrb[15].mxu0 }
 0x18b   :  { %v1250_v14 = vadd.f32 %v1249_v13, %v1248_v10  ;;  %v1289_v15 = vpop.f32.mrb[15].mxu1 }
 0x18c   :  { %v1706_v16 = vadd.f32 %v1287_v11, %v1247_v8  ;;  %v1290_v17 = vadd.f32 %v1289_v15, %v1288_v12 }
 0x18e   :  { %v1708_v18 = vadd.f32 %v1290_v17, %v1250_v14 }
 0x18f   :  { %v1307_v19 = vpop.f32.mrb[16].mxu0 }
 0x190   :  { %v1308_v20 = vpop.f32.mrb[17].mxu0 }
 0x191   :  { %v1347_v21 = vpop.f32.mrb[16].mxu1  ;;  %v1309_v22 = vadd.f32 %v1308_v20, %v1307_v19  ;;  %v1310_v23 = vpop.f32.mrb[18].mxu0 }
 0x192   :  { %v1348_v24 = vpop.f32.mrb[17].mxu1  ;;  %v1311_v25 = vpop.f32.mrb[19].mxu0 }
 0x193   :  { %v904_v26 = vadd.f32 %v1309_v22, %v839_v38  ;;  %v1349_v27 = vadd.f32 %v1348_v24, %v1347_v21  ;;  %v1350_v28 = vpop.f32.mrb[18].mxu1  ;;  %v1312_v29 = vadd.f32 %v1311_v25, %v1310_v23 }
 0x194   :  { %v1351_v30 = vpop.f32.mrb[19].mxu1 }
 0x195   :  { %v969_v31 = vadd.f32 %v1349_v27, %v904_v26  ;;  %v907_v32 = vadd.f32 %v1312_v29, %v842_v40  ;;  %v1352_v33 = vadd.f32 %v1351_v30, %v1350_v28 }
 0x197   :  { %v972_v34 = vadd.f32 %v1352_v33, %v907_v32  ;;  %v1313_v35 = vpop.f32.mrb[20].mxu0 }
 0x198   :  { %v1314_v36 = vpop.f32.mrb[21].mxu0 }
 0x199   :  { %v1191_v37 = vpack.c.bf16 %v972_v34, %v969_v31  ;;  %v1353_v39 = vpop.f32.mrb[20].mxu1  ;;  %v1315_v41 = vadd.f32 %v1314_v36, %v1313_v35  ;;  %v1316_v42 = vpop.f32.mrb[22].mxu0 }
 0x19a   :  { %v1354_v43 = vpop.f32.mrb[21].mxu1  ;;  %v1317_v44 = vpop.f32.mrb[23].mxu0 }
 0x19b   :  { %1192 = vst [vmem:[%s1727_s2] sm:$0xff] %v1191_v37   ;;  %v912_v38 = vadd.f32 %v1315_v41, %v847_v52  ;;  %v1355_v45 = vadd.f32 %v1354_v43, %v1353_v39  ;;  %v1356_v46 = vpop.f32.mrb[22].mxu1  ;;  %v1318_v47 = vadd.f32 %v1317_v44, %v1316_v42 }
 0x19c   :  { %v1357_v48 = vpop.f32.mrb[23].mxu1 }
 0x19d   :  { %v977_v40 = vadd.f32 %v1355_v45, %v912_v38  ;;  %v915_v49 = vadd.f32 %v1318_v47, %v850_v54  ;;  %v1358_v50 = vadd.f32 %v1357_v48, %v1356_v46 }
 0x19f   :  { %v980_v51 = vadd.f32 %v1358_v50, %v915_v49  ;;  %v1319_v53 = vpop.f32.mrb[24].mxu0 }
 0x1a0   :  { %v1320_v55 = vpop.f32.mrb[25].mxu0 }
 0x1a1   :  { %v1196_v56 = vpack.c.bf16 %v980_v51, %v977_v40  ;;  %v1359_v57 = vpop.f32.mrb[24].mxu1  ;;  %v1321_v58 = vadd.f32 %v1320_v55, %v1319_v53  ;;  %v1322_v59 = vpop.f32.mrb[26].mxu0 }
 0x1a2   :  { %v1360_v60 = vpop.f32.mrb[25].mxu1  ;;  %v1323_v61 = vpop.f32.mrb[27].mxu0 }
 0x1a3   :  { %1208 = vst [vmem:[%s1727_s2 + $0x8] sm:$0xff] %v1196_v56   ;;  %v920_v52 = vadd.f32 %v1321_v58, %v855_v2  ;;  %v1361_v62 = vadd.f32 %v1360_v60, %v1359_v57  ;;  %v1362_v63 = vpop.f32.mrb[26].mxu1  ;;  %v1324_v0 = vadd.f32 %v1323_v61, %v1322_v59 }
 0x1a4   :  { %v1363_v1 = vpop.f32.mrb[27].mxu1 }
 0x1a5   :  { %v985_v54 = vadd.f32 %v1361_v62, %v920_v52  ;;  %v923_v3 = vadd.f32 %v1324_v0, %v1704_v4  ;;  %v1364_v5 = vadd.f32 %v1363_v1, %v1362_v63 }
 0x1a7   :  { %v988_v6 = vadd.f32 %v1364_v5, %v923_v3  ;;  %v1325_v7 = vpop.f32.mrb[28].mxu0 }
 0x1a8   :  { %v1326_v8 = vpop.f32.mrb[29].mxu0 }
 0x1a9   :  { %v1201_v9 = vpack.c.bf16 %v988_v6, %v985_v54  ;;  %v1365_v10 = vpop.f32.mrb[28].mxu1  ;;  %v1327_v11 = vadd.f32 %v1326_v8, %v1325_v7  ;;  %v1328_v12 = vpop.f32.mrb[30].mxu0 }
 0x1aa   :  { %v1366_v13 = vpop.f32.mrb[29].mxu1  ;;  %v1329_v14 = vpop.f32.mrb[31].mxu0 }
 0x1ab   :  { %1209 = vst [vmem:[%s1727_s2 + $0x10] sm:$0xff] %v1201_v9   ;;  %v928_v2 = vadd.f32 %v1327_v11, %v1706_v16  ;;  %v1367_v15 = vadd.f32 %v1366_v13, %v1365_v10  ;;  %v1368_v17 = vpop.f32.mrb[30].mxu1  ;;  %v1330_v19 = vadd.f32 %v1329_v14, %v1328_v12 }
 0x1ac   :  { %v1369_v4 = vpop.f32.mrb[31].mxu1 }
 0x1ad   :  { %v993_v20 = vadd.f32 %v1367_v15, %v928_v2  ;;  %v931_v21 = vadd.f32 %v1330_v19, %v1708_v18  ;;  %v1370_v22 = vadd.f32 %v1369_v4, %v1368_v17 }
 0x1af   :  { %v996_v23 = vadd.f32 %v1370_v22, %v931_v21 }
 0x1b1   :  { %v1206_v24 = vpack.c.bf16 %v996_v23, %v993_v20 }
 0x1b3   :  { %1210 = vst [vmem:[%s1727_s2 + $0x18] sm:$0xff] %v1206_v24  }
 0x1b4   :  { %1043 = vsyncpa [#allocation3], 1 }

</bundles_post_ra>
